<compile_context>
chip_gen: v5e
topology: v5e:2x2
jax: 0.10.0
libtpu: 0.0.40
codegen_flags: <defaults>
</compile_context>

<pallas_src>
import functools

import numpy as np
import jax
import jax.numpy as jnp
from jax.experimental import pallas as pl
from jax.experimental.pallas import tpu as pltpu


def _round_up(x, m):
    return -(-x // m) * m


def integrand_mlp_kernel(x_ref, w_ref, b_ref, o_ref, *, widths):
    """Transposed shared MLP on one (nin, tm) activation block.

    x_ref : (nin, tm)        activations, batch*in_d on the lane axis
    w_ref : (L, Wmax, Wmax)  all layer weights, (out, in)-major, zero padded
    b_ref : (L, Wmax, 1)     all layer biases, zero padded
    o_ref : (1, tm)          final output row: ELU(z) + 1.0
    """
    n_layers = len(widths) - 1
    act = x_ref[...]                                          # (nin, tm) f32
    for li in range(n_layers):
        in_w, out_w = widths[li], widths[li + 1]
        b = b_ref[li, :out_w, :]                              # (out_w, 1)
        if li == 0 and in_w <= 8:
            # K == nin is tiny: rank-nin VPU broadcast FMAs instead of an MXU
            # pass at ~nin/256 contraction utilization.
            w0 = w_ref[0, :out_w, :]                          # (out_w, Wmax)
            z = w0[:, 0:1] * act[0:1, :] + b
            for k in range(1, in_w):
                z = z + w0[:, k:k + 1] * act[k:k + 1, :]
        else:
            w = w_ref[li, :out_w, :in_w]                      # (out_w, in_w)
            z = jnp.dot(w, act, preferred_element_type=jnp.float32) + b
        if li < n_layers - 1:
            act = jnp.maximum(z, 0.01 * z)                    # LeakyReLU(0.01)
        else:
            # Only row 0 of the (sublane-padded) last layer is real.  ELU
            # (alpha=1) then IntegrandNetwork's +1.0.  min() avoids exp
            # overflow on the positive branch that where() still evaluates.
            z0 = z[0:1, :]
            o_ref[...] = (jnp.where(z0 > 0, z0,
                                    jnp.exp(jnp.minimum(z0, 0.0)) - 1.0)
                          + 1.0).astype(o_ref.dtype)


def pack_integrand_params(params, nin):
    """Host-side (numpy) packing of per-layer (w, b) (w stored as (in, out) ==
    torch W.T) into one zero-padded blob.  Hidden widths are rounded up to 64
    and the final width to 8 so every in-kernel tile is sublane aligned.  Done
    once, outside jit, so no per-call scatter/pad ops are traced."""
    n_layers = len(params)
    outs = [int(w.shape[1]) for (w, _) in params]
    out_pad = [_round_up(o, 64) if li < n_layers - 1 else _round_up(o, 8)
               for li, o in enumerate(outs)]
    widths = (nin,) + tuple(out_pad)
    wmax = max(max(widths[1:]), _round_up(nin, 8))
    w_blob = np.zeros((n_layers, wmax, wmax), np.float32)
    b_blob = np.zeros((n_layers, wmax, 1), np.float32)
    for li, (w, b) in enumerate(params):
        w_np = np.asarray(w, dtype=np.float32)
        b_np = np.asarray(b, dtype=np.float32)
        w_blob[li, :w_np.shape[1], :w_np.shape[0]] = w_np.T   # (out, in)
        b_blob[li, :b_np.shape[0], 0] = b_np
    return jnp.asarray(w_blob), jnp.asarray(b_blob), widths


@functools.partial(jax.jit,
                   static_argnames=("in_d", "out_made", "widths", "tm"))
def embedding_network_forward(x_t, h, w_blob, b_blob, *, in_d, out_made,
                              widths, tm=512):
    """Pallas-backed equivalent of EmbeddingNetwork.forward(x_t) with
    self.m_embeding == h and self.parallel_nets weights packed via
    pack_integrand_params."""
    B = x_t.shape[0]
    nin = 1 + out_made
    M = B * in_d

    # Lane-major tiling: tile size is a multiple of 128; M is padded (not
    # asserted) so any batch size works.  Padded columns are discarded below.
    tm = _round_up(tm, 128)
    tm_eff = min(tm, _round_up(M, 128))
    Mp = _round_up(M, tm_eff)

    # Transposed slab (nin, M) from cheap reshapes — no cat/transpose/
    # contiguous of the (B*in_d, nin) slab as in the PyTorch code.
    rows = [x_t.reshape(1, M)]
    if out_made > 0:
        rows.append(
            jnp.transpose(h.reshape(B, out_made, in_d),
                          (1, 0, 2)).reshape(out_made, M))
    x_heT = jnp.concatenate(rows, axis=0) if len(rows) > 1 else rows[0]
    x_heT = jnp.pad(x_heT, ((0, 0), (0, Mp - M))).astype(jnp.float32)

    kernel = functools.partial(integrand_mlp_kernel, widths=widths)
    out = pl.pallas_call(
        kernel,
        out_shape=jax.ShapeDtypeStruct((1, Mp), jnp.float32),
        grid=(Mp // tm_eff,),
        in_specs=[
            pl.BlockSpec((nin, tm_eff), lambda i: (0, i)),
            pl.BlockSpec(w_blob.shape, lambda i: (0, 0, 0)),   # resident weights
            pl.BlockSpec(b_blob.shape, lambda i: (0, 0, 0)),   # resident biases
        ],
        out_specs=pl.BlockSpec((1, tm_eff), lambda i: (0, i)),
        compiler_params=pltpu.CompilerParams(
            dimension_semantics=("parallel",)),
    )(x_heT, w_blob, b_blob)

    # y.view(nb_batch, -1); the +1.0 is already applied in-kernel.
    return out[0, :M].reshape(B, in_d)


def init_integrand_params(key, in_d, out_made, hiddens):
    """Deterministic init matching nn.Linear shapes: hs = [1+out_made]+hiddens+[1]."""
    hs = [1 + out_made] + list(hiddens) + [1]
    params = []
    for h0, h1 in zip(hs, hs[1:]):
        key, kw, kb = jax.random.split(key, 3)
        bound = 1.0 / (h0 ** 0.5)
        # stored as (in_features, out_features) == W.T of torch Linear
        w = jax.random.uniform(kw, (h0, h1), jnp.float32, -bound, bound)
        b = jax.random.uniform(kb, (h1,), jnp.float32, -bound, bound)
        params.append((w, b))
    return params


def reference_forward(x_t, h, params, *, in_d, out_made):
    B = x_t.shape[0]
    nin = 1 + out_made
    cat = jnp.concatenate([x_t, h], axis=1)
    z = jnp.transpose(cat.reshape(B, nin, in_d), (0, 2, 1)).reshape(B * in_d, nin)
    for li, (w, b) in enumerate(params):
        z = z @ w + b
        if li < len(params) - 1:
            z = jnp.where(z > 0, z, 0.01 * z)
        else:
            z = jnp.where(z > 0, z, jnp.exp(z) - 1.0)
    return z.reshape(B, in_d) + 1.0


if __name__ == "__main__":
    # Small shapes consistent with the module defaults (out_made=1, hidden=50)
    B, in_d, out_made = 4, 8, 1
    hiddens_integrand = [50, 50, 50, 50]

    key = jax.random.PRNGKey(0)
    k_x, k_h, k_p = jax.random.split(key, 3)
    x_t = jax.random.normal(k_x, (B, in_d), jnp.float32)
    # m_embeding produced by MADE would have shape (B, in_d*out_made)
    m_embeding = jax.random.normal(k_h, (B, in_d * out_made), jnp.float32)

    params = init_integrand_params(k_p, in_d, out_made, hiddens_integrand)
    w_blob, b_blob, widths = pack_integrand_params(params, 1 + out_made)

    y = jax.block_until_ready(
        embedding_network_forward(x_t, m_embeding, w_blob, b_blob,
                                  in_d=in_d, out_made=out_made, widths=widths))

    y_ref = reference_forward(x_t, m_embeding, params,
                              in_d=in_d, out_made=out_made)
    assert y.shape == (B, in_d)
    assert jnp.allclose(y, y_ref, atol=1e-4, rtol=1e-4), (
        f"max err {jnp.max(jnp.abs(y - y_ref))}")

    print("KERNEL_OK")
</pallas_src>

<mosaic_0001>
module attributes {stable_mosaic.version = 11 : i64} {
  func.func @integrand_mlp_kernel(%arg0: i32, %arg1: memref<2x128xf32, #tpu.memory_space<vmem>>, %arg2: memref<5x64x64xf32, #tpu.memory_space<vmem>>, %arg3: memref<5x64x1xf32, #tpu.memory_space<vmem>>, %arg4: memref<1x128xf32, #tpu.memory_space<vmem>>) attributes {dimension_semantics = [#tpu.dimension_semantics<parallel>], iteration_bounds = array<i64: 1>, scalar_prefetch = 0 : i64, scratch_operands = 0 : i64, tpu.core_type = #tpu.core_type<tc>, window_params = [{transform_indices = @transform_0, window_bounds = array<i64: 2, 128>}, {pipeline_mode = #tpu.pipeline_mode<synchronous>, transform_indices = @transform_1, window_bounds = array<i64: 5, 64, 64>}, {pipeline_mode = #tpu.pipeline_mode<synchronous>, transform_indices = @transform_2, window_bounds = array<i64: 5, 64, 1>}, {transform_indices = @transform_3, window_bounds = array<i64: 1, 128>}]} {
    %c0 = arith.constant 0 : index
    %c0_0 = arith.constant 0 : index
    %0 = vector.load %arg1[%c0, %c0_0] : memref<2x128xf32, #tpu.memory_space<vmem>>, vector<2x128xf32>
    %c0_1 = arith.constant 0 : index
    %c0_2 = arith.constant 0 : index
    %c0_3 = arith.constant 0 : index
    %1 = vector.load %arg3[%c0_1, %c0_2, %c0_3] : memref<5x64x1xf32, #tpu.memory_space<vmem>>, vector<1x64x1xf32>
    %2 = vector.shape_cast %1 : vector<1x64x1xf32> to vector<64x1xf32>
    %c0_4 = arith.constant 0 : index
    %c0_5 = arith.constant 0 : index
    %c0_6 = arith.constant 0 : index
    %3 = vector.load %arg2[%c0_4, %c0_5, %c0_6] : memref<5x64x64xf32, #tpu.memory_space<vmem>>, vector<1x64x64xf32>
    %4 = vector.shape_cast %3 : vector<1x64x64xf32> to vector<64x64xf32>
    %5 = vector.extract_strided_slice %4 {offsets = [0, 0], sizes = [64, 1], strides = [1, 1]} : vector<64x64xf32> to vector<64x1xf32>
    %6 = vector.extract_strided_slice %0 {offsets = [0, 0], sizes = [1, 128], strides = [1, 1]} : vector<2x128xf32> to vector<1x128xf32>
    %7 = vector.broadcast %5 : vector<64x1xf32> to vector<64x128xf32>
    %8 = vector.broadcast %6 : vector<1x128xf32> to vector<64x128xf32>
    %9 = arith.mulf %7, %8 : vector<64x128xf32>
    %10 = vector.broadcast %2 : vector<64x1xf32> to vector<64x128xf32>
    %11 = arith.addf %9, %10 : vector<64x128xf32>
    %12 = vector.extract_strided_slice %4 {offsets = [0, 1], sizes = [64, 1], strides = [1, 1]} : vector<64x64xf32> to vector<64x1xf32>
    %13 = vector.extract_strided_slice %0 {offsets = [1, 0], sizes = [1, 128], strides = [1, 1]} : vector<2x128xf32> to vector<1x128xf32>
    %14 = vector.broadcast %12 : vector<64x1xf32> to vector<64x128xf32>
    %15 = vector.broadcast %13 : vector<1x128xf32> to vector<64x128xf32>
    %16 = arith.mulf %14, %15 : vector<64x128xf32>
    %17 = arith.addf %11, %16 : vector<64x128xf32>
    %cst = arith.constant 0.00999999977 : f32
    %18 = vector.broadcast %cst : f32 to vector<64x128xf32>
    %19 = arith.mulf %18, %17 : vector<64x128xf32>
    %20 = arith.maximumf %17, %19 : vector<64x128xf32>
    %c1 = arith.constant 1 : index
    %c0_7 = arith.constant 0 : index
    %c0_8 = arith.constant 0 : index
    %21 = vector.load %arg3[%c1, %c0_7, %c0_8] : memref<5x64x1xf32, #tpu.memory_space<vmem>>, vector<1x64x1xf32>
    %22 = vector.shape_cast %21 : vector<1x64x1xf32> to vector<64x1xf32>
    %c1_9 = arith.constant 1 : index
    %c0_10 = arith.constant 0 : index
    %c0_11 = arith.constant 0 : index
    %23 = vector.load %arg2[%c1_9, %c0_10, %c0_11] : memref<5x64x64xf32, #tpu.memory_space<vmem>>, vector<1x64x64xf32>
    %24 = vector.shape_cast %23 : vector<1x64x64xf32> to vector<64x64xf32>
    %cst_12 = arith.constant dense<0.000000e+00> : vector<64x128xf32>
    %25 = tpu.matmul %24, %20, %cst_12 {dimension_numbers = #tpu.dot_dimension_numbers<[1], [0], [0], [1], [0, 0, 1, 1], [], []>} : vector<64x64xf32>, vector<64x128xf32>, vector<64x128xf32> -> vector<64x128xf32>
    %26 = vector.broadcast %22 : vector<64x1xf32> to vector<64x128xf32>
    %27 = arith.addf %25, %26 : vector<64x128xf32>
    %cst_13 = arith.constant 0.00999999977 : f32
    %28 = vector.broadcast %cst_13 : f32 to vector<64x128xf32>
    %29 = arith.mulf %28, %27 : vector<64x128xf32>
    %30 = arith.maximumf %27, %29 : vector<64x128xf32>
    %c2 = arith.constant 2 : index
    %c0_14 = arith.constant 0 : index
    %c0_15 = arith.constant 0 : index
    %31 = vector.load %arg3[%c2, %c0_14, %c0_15] : memref<5x64x1xf32, #tpu.memory_space<vmem>>, vector<1x64x1xf32>
    %32 = vector.shape_cast %31 : vector<1x64x1xf32> to vector<64x1xf32>
    %c2_16 = arith.constant 2 : index
    %c0_17 = arith.constant 0 : index
    %c0_18 = arith.constant 0 : index
    %33 = vector.load %arg2[%c2_16, %c0_17, %c0_18] : memref<5x64x64xf32, #tpu.memory_space<vmem>>, vector<1x64x64xf32>
    %34 = vector.shape_cast %33 : vector<1x64x64xf32> to vector<64x64xf32>
    %cst_19 = arith.constant dense<0.000000e+00> : vector<64x128xf32>
    %35 = tpu.matmul %34, %30, %cst_19 {dimension_numbers = #tpu.dot_dimension_numbers<[1], [0], [0], [1], [0, 0, 1, 1], [], []>} : vector<64x64xf32>, vector<64x128xf32>, vector<64x128xf32> -> vector<64x128xf32>
    %36 = vector.broadcast %32 : vector<64x1xf32> to vector<64x128xf32>
    %37 = arith.addf %35, %36 : vector<64x128xf32>
    %cst_20 = arith.constant 0.00999999977 : f32
    %38 = vector.broadcast %cst_20 : f32 to vector<64x128xf32>
    %39 = arith.mulf %38, %37 : vector<64x128xf32>
    %40 = arith.maximumf %37, %39 : vector<64x128xf32>
    %c3 = arith.constant 3 : index
    %c0_21 = arith.constant 0 : index
    %c0_22 = arith.constant 0 : index
    %41 = vector.load %arg3[%c3, %c0_21, %c0_22] : memref<5x64x1xf32, #tpu.memory_space<vmem>>, vector<1x64x1xf32>
    %42 = vector.shape_cast %41 : vector<1x64x1xf32> to vector<64x1xf32>
    %c3_23 = arith.constant 3 : index
    %c0_24 = arith.constant 0 : index
    %c0_25 = arith.constant 0 : index
    %43 = vector.load %arg2[%c3_23, %c0_24, %c0_25] : memref<5x64x64xf32, #tpu.memory_space<vmem>>, vector<1x64x64xf32>
    %44 = vector.shape_cast %43 : vector<1x64x64xf32> to vector<64x64xf32>
    %cst_26 = arith.constant dense<0.000000e+00> : vector<64x128xf32>
    %45 = tpu.matmul %44, %40, %cst_26 {dimension_numbers = #tpu.dot_dimension_numbers<[1], [0], [0], [1], [0, 0, 1, 1], [], []>} : vector<64x64xf32>, vector<64x128xf32>, vector<64x128xf32> -> vector<64x128xf32>
    %46 = vector.broadcast %42 : vector<64x1xf32> to vector<64x128xf32>
    %47 = arith.addf %45, %46 : vector<64x128xf32>
    %cst_27 = arith.constant 0.00999999977 : f32
    %48 = vector.broadcast %cst_27 : f32 to vector<64x128xf32>
    %49 = arith.mulf %48, %47 : vector<64x128xf32>
    %50 = arith.maximumf %47, %49 : vector<64x128xf32>
    %c4 = arith.constant 4 : index
    %c0_28 = arith.constant 0 : index
    %c0_29 = arith.constant 0 : index
    %51 = vector.load %arg3[%c4, %c0_28, %c0_29] : memref<5x64x1xf32, #tpu.memory_space<vmem>>, vector<1x8x1xf32>
    %52 = vector.shape_cast %51 : vector<1x8x1xf32> to vector<8x1xf32>
    %c4_30 = arith.constant 4 : index
    %c0_31 = arith.constant 0 : index
    %c0_32 = arith.constant 0 : index
    %53 = vector.load %arg2[%c4_30, %c0_31, %c0_32] : memref<5x64x64xf32, #tpu.memory_space<vmem>>, vector<1x8x64xf32>
    %54 = vector.shape_cast %53 : vector<1x8x64xf32> to vector<8x64xf32>
    %cst_33 = arith.constant dense<0.000000e+00> : vector<8x128xf32>
    %55 = tpu.matmul %54, %50, %cst_33 {dimension_numbers = #tpu.dot_dimension_numbers<[1], [0], [0], [1], [0, 0, 1, 1], [], []>} : vector<8x64xf32>, vector<64x128xf32>, vector<8x128xf32> -> vector<8x128xf32>
    %56 = vector.broadcast %52 : vector<8x1xf32> to vector<8x128xf32>
    %57 = arith.addf %55, %56 : vector<8x128xf32>
    %58 = vector.extract_strided_slice %57 {offsets = [0, 0], sizes = [1, 128], strides = [1, 1]} : vector<8x128xf32> to vector<1x128xf32>
    %cst_34 = arith.constant 0.000000e+00 : f32
    %59 = vector.broadcast %cst_34 : f32 to vector<1x128xf32>
    %60 = arith.cmpf ogt, %58, %59 : vector<1x128xf32>
    %cst_35 = arith.constant 0.000000e+00 : f32
    %61 = vector.broadcast %cst_35 : f32 to vector<1x128xf32>
    %62 = arith.minimumf %58, %61 : vector<1x128xf32>
    %63 = math.exp %62 : vector<1x128xf32>
    %cst_36 = arith.constant 1.000000e+00 : f32
    %64 = vector.broadcast %cst_36 : f32 to vector<1x128xf32>
    %65 = arith.subf %63, %64 : vector<1x128xf32>
    %66 = arith.select %60, %58, %65 : vector<1x128xi1>, vector<1x128xf32>
    %cst_37 = arith.constant 1.000000e+00 : f32
    %67 = vector.broadcast %cst_37 : f32 to vector<1x128xf32>
    %68 = arith.addf %66, %67 : vector<1x128xf32>
    %c0_38 = arith.constant 0 : index
    %c0_39 = arith.constant 0 : index
    %69 = vector.load %arg4[%c0_38, %c0_39] : memref<1x128xf32, #tpu.memory_space<vmem>>, vector<1x128xf32>
    tpu.vector_store %arg4[%c0_38, %c0_39], %68 {strides = array<i32>} : memref<1x128xf32, #tpu.memory_space<vmem>>, vector<1x128xf32>,
    return
  }
  func.func @transform_0(%arg0: i32) -> (i32, i32) {
    %c0_i32 = arith.constant 0 : i32
    %c0_i32_0 = arith.constant 0 : i32
    return %c0_i32, %arg0 : i32, i32
  }
  func.func @transform_1(%arg0: i32) -> (i32, i32, i32) {
    %c0_i32 = arith.constant 0 : i32
    %c0_i32_0 = arith.constant 0 : i32
    %c0_i32_1 = arith.constant 0 : i32
    %c0_i32_2 = arith.constant 0 : i32
    return %c0_i32, %c0_i32_0, %c0_i32_1 : i32, i32, i32
  }
  func.func @transform_2(%arg0: i32) -> (i32, i32, i32) {
    %c0_i32 = arith.constant 0 : i32
    %c0_i32_0 = arith.constant 0 : i32
    %c0_i32_1 = arith.constant 0 : i32
    %c0_i32_2 = arith.constant 0 : i32
    return %c0_i32, %c0_i32_0, %c0_i32_1 : i32, i32, i32
  }
  func.func @transform_3(%arg0: i32) -> (i32, i32) {
    %c0_i32 = arith.constant 0 : i32
    %c0_i32_0 = arith.constant 0 : i32
    return %c0_i32, %arg0 : i32, i32
  }
}

</mosaic_0001>

<bundles_post_ra>
// kernel: squeeze.1
= control target key start
LH: loop header
LB: loop body
LE: loop exit
PB: predicated region body
PF: predicated region fallthrough
CT: control target
= control target key end

     0   :  { %s96_s0 = inlined_call_operand.vmem [shape: f32[32], index: 0, kind: input, shape index: {}]   ;;  %s97_s1 = inlined_call_operand.hbm [shape: f32[4,8], index: 1, kind: output, shape index: {}]  }
   0x1   :  { %v5_v0 = vld [vmem:[%s96_s0] sm:$0x1] }
   0x2   :  { %6 = vst [vmem:[#allocation3] sm:$0x1] %v5_v0 }
   0x3   :  { %2 = vsyncpa [#allocation1], 0  ;;  %s76_s0 = smov 120   ;;  %s77_s8 = smov 104   ;;  %vm8_vm0 = vcmask 64512  }
   0x4   :  { %s78_s9 = smov 112   ;;  %s79_s10 = smov [#allocation0]  }
   0x5   :  { %s37_s11 = sshll.u32 %s79_s10, 4  ;;  %s39_s1 = sshll.u32 %s97_s1, 4  ;;  %s38_s11 = int_to_ptr.vmem [resolvable:$true] %s37_s11  ;;  %s40_s1 = int_to_ptr.hbm [resolvable:$true] %s39_s1 }
   0x9   :  { %v10_v1 = vld [vmem:[#allocation3] sm:$0x1]  }
   0xa   :  { %v22_v2 = vld [vmem:[#allocation3] sm:$0x1]   ;;  %11 = vrot.lane.b32.xlu0 %v10_v1, %s76_s0 }
   0xb   :  { %23 = vrot.lane.b32.xlu1 %v22_v2, %s77_s8  ;;  %v16_v3 = vld [vmem:[#allocation3] sm:$0x1]  }
   0xc   :  { %v7_v4 = vld [vmem:[#allocation3] sm:$0x1]  }
   0xd   :  { %9 = vst.msk [vmem:[#allocation2] sm:$0x1] %vm8_vm0, %v7_v4  }
  0x12   :  { %17 = vrot.lane.b32.xlu0 %v16_v3, %s78_s9 }
  0x7c   :  { %v12_v5 = vpop.permute.xlu0 %11  }
  0x7d   :  { %v24_v6 = vpop.permute.xlu1 %23   ;;  %15 = vst.msk [vmem:[#allocation2 + $0x1] sm:$0x1] %vm8_vm0, %v12_v5  }
  0x7e   :  { %27 = vst.msk [vmem:[#allocation2 + $0x3] sm:$0x1] %vm8_vm0, %v24_v6  }
  0x84   :  { %v18_v7 = vpop.permute.xlu0 %17  }
  0x85   :  { %21 = vst.msk [vmem:[#allocation2 + $0x2] sm:$0x1] %vm8_vm0, %v18_v7  }
  0x8c   :  { %v30_v8 = vld [vmem:[#allocation2] sm:$0xf] }
  0x8d   :  { %33 = vst [vmem:[#allocation0] sm:$0xf] %v30_v8 }
  0x8e   :  { %42 = dma.vmem_to_hbm [thread:$0]  %s38_s11, 64, %s40_s1, [#allocation1]  }
  0x8f   :  { %74 = dma.done.wait [#allocation1], 64  }
  0x90   :  { %75 = vsyncadd [#allocation1], 4294967232 }
  0x91   :  { %45 = vsyncpa [#allocation1], 1 }

// kernel: embedding_network_forward.1
= control target key start
LH: loop header
LB: loop body
LE: loop exit
PB: predicated region body
PF: predicated region fallthrough
CT: control target
= control target key end

     0   :  { %v747_v0 = vmov 1   ;;  %v748_v1 = vmov 0   ;;  %vm251_vm0 = vcmask 523264   ;;  %s1018_s2 = inlined_call_operand.vmem [shape: f32[5,64,1], index: 2, kind: input, shape index: {}]   ;;  %s1019_s1 = inlined_call_operand.vmem [shape: f32[5,64,64], index: 1, kind: input, shape index: {}]   ;;  %s1020_s0 = inlined_call_operand.vmem [shape: f32[2,128], index: 0, kind: input, shape index: {}]   ;;  %s1021_s3 = inlined_call_operand.vmem [shape: f32[1,128], index: 3, kind: output, shape index: {}]  }
   0x1   :  { %736 = vset.pattern.permute.xlu0 %v747_v0  ;;  %733 = vset.pattern.permute.xlu1 %v748_v1  ;;  %v22_v2 = vld [vmem:[%s1018_s2 + $0x38] sm:$0xff]  ;;  %v29_v3 = vld [vmem:[%s1019_s1 + $0x30] sm:$0xff]  ;;  %v28_v4 = vld [vmem:[%s1019_s1 + $0x28] sm:$0xff] }
   0x2   :  { %117 = vperm.xlu1 %733, %v22_v2   ;;  %153 = vperm.xlu0 %736, %v29_v3   ;;  %v30_v5 = vld [vmem:[%s1019_s1 + $0x38] sm:$0xff]  ;;  %v21_v6 = vld [vmem:[%s1018_s2 + $0x30] sm:$0xff]  ;;  %v20_v7 = vld [vmem:[%s1018_s2 + $0x28] sm:$0xff] }
   0x3   :  { %735 = vset.pattern.permute.xlu2 %v748_v1  ;;  %v27_v8 = vld [vmem:[%s1019_s1 + $0x20] sm:$0xff]  ;;  %v26_v10 = vld [vmem:[%s1019_s1 + $0x18] sm:$0xff]  ;;  %v24_v11 = vld [vmem:[%s1019_s1 + $0x8] sm:$0xff] }
   0x4   :  { %58 = vperm.xlu2 %735, %v28_v4   ;;  %v19_v9 = vld [vmem:[%s1018_s2 + $0x20] sm:$0xff]  ;;  %v25_v12 = vld [vmem:[%s1019_s1 + $0x10] sm:$0xff]  ;;  %v18_v14 = vld [vmem:[%s1018_s2 + $0x18] sm:$0xff] }
   0x5   :  { %v23_v13 = vld [vmem:[%s1019_s1] sm:$0xff]  ;;  %v17_v16 = vld [vmem:[%s1018_s2 + $0x10] sm:$0xff]  ;;  %v16_v18 = vld [vmem:[%s1018_s2 + $0x8] sm:$0xff] }
   0x6   :  { %v15_v15 = vld [vmem:[%s1018_s2] sm:$0xff]  ;;  %v661_v17 = vld [vmem:[%s1018_s2 + $0x70] sm:$0xff]  ;;  %v658_v19 = vld [vmem:[%s1018_s2 + $0x58] sm:$0xff] }
   0x7   :  { %v655_v20 = vld [vmem:[%s1018_s2 + $0x40] sm:$0xff]  ;;  %v684_v21 = vld [vmem:[%s1018_s2 + $0xa8] sm:$0xff]  ;;  %v681_v22 = vld [vmem:[%s1018_s2 + $0x90] sm:$0xff] }
   0x8   :  { %v710_v23 = vld [vmem:[%s1018_s2 + $0xf8] sm:$0xff]  ;;  %v707_v24 = vld [vmem:[%s1018_s2 + $0xe0] sm:$0xff]  ;;  %v704_v26 = vld [vmem:[%s1018_s2 + $0xc8] sm:$0xff] }
   0x9   :  { %v14_v30 = vld [vmem:[%s1020_s0] sm:$0x3] }
   0xa   :  { %734 = vset.pattern.permute.xlu1 %v747_v0  ;;  %737 = vset.pattern.permute.xlu0 %v748_v1  ;;  %v844_v31 = vperm.slane %v14_v30, 0  ;;  %v846_v32 = vperm.slane %v14_v30, 1  ;;  %v662_v30 = vld [vmem:[%s1018_s2 + $0x78] sm:$0xff] }
   0xb   :  { %157 = vperm.xlu1 %734, %v30_v5   ;;  %68 = vperm.xlu0 %737, %v30_v5  }
   0xc   :  { %112 = vperm.xlu2 %735, %v21_v6  }
  0x13   :  { %738 = vset.pattern.permute.xlu1 %v748_v1  ;;  %63 = vperm.xlu0 %737, %v29_v3  }
  0x14   :  { %107 = vperm.xlu2 %735, %v20_v7   ;;  %53 = vperm.xlu1 %738, %v27_v8  }
  0x1b   :  { %102 = vperm.xlu0 %737, %v19_v9  }
  0x1c   :  { %739 = vset.pattern.permute.xlu1 %v747_v0  ;;  %48 = vperm.xlu2 %735, %v26_v10  }
  0x1d   :  { %149 = vperm.xlu1 %739, %v28_v4  }
  0x23   :  { %38 = vperm.xlu0 %737, %v24_v11  }
  0x24   :  { %43 = vperm.xlu2 %735, %v25_v12  }
  0x25   :  { %145 = vperm.xlu1 %739, %v27_v8  }
  0x2b   :  { %33 = vperm.xlu0 %737, %v23_v13  }
  0x2c   :  { %741 = vset.pattern.permute.xlu2 %v747_v0 }
  0x2d   :  { %740 = vset.pattern.permute.xlu1 %v748_v1  ;;  %141 = vperm.xlu2 %741, %v26_v10  }
  0x2e   :  { %97 = vperm.xlu1 %740, %v18_v14  }
  0x33   :  { %82 = vperm.xlu0 %737, %v15_v15  }
  0x35   :  { %137 = vperm.xlu2 %741, %v25_v12  }
  0x36   :  { %92 = vperm.xlu1 %740, %v17_v16  }
  0x3b   :  { %243 = vperm.xlu0 %737, %v661_v17  }
  0x3d   :  { %133 = vperm.xlu2 %741, %v24_v11  }
  0x3e   :  { %87 = vperm.xlu1 %740, %v16_v18  }
  0x43   :  { %228 = vperm.xlu0 %737, %v658_v19  }
  0x45   :  { %743 = vset.pattern.permute.xlu2 %v748_v1 }
  0x46   :  { %742 = vset.pattern.permute.xlu1 %v747_v0  ;;  %248 = vperm.xlu2 %743, %v662_v30  }
  0x47   :  { %129 = vperm.xlu1 %742, %v23_v13  }
  0x4b   :  { %213 = vperm.xlu0 %737, %v655_v20   ;;  %v660_v20 = vld [vmem:[%s1018_s2 + $0x68] sm:$0xff] }
  0x4f   :  { %744 = vset.pattern.permute.xlu1 %v748_v1 }
  0x50   :  { %238 = vperm.xlu1 %744, %v660_v20  }
  0x53   :  { %378 = vperm.xlu0 %737, %v684_v21  }
  0x5b   :  { %363 = vperm.xlu0 %737, %v681_v22  }
  0x5e   :  { %v59_v25 = vpop.permute.xlu2 %58 }
  0x5f   :  { %v77_v49 = vmul.f32 %v844_v31, %v59_v25 }
  0x63   :  { %527 = vperm.xlu0 %737, %v710_v23  }
  0x66   :  { %v113_v27 = vpop.permute.xlu2 %112 }
  0x6b   :  { %512 = vperm.xlu0 %737, %v707_v24  }
  0x6e   :  { %v108_v35 = vpop.permute.xlu2 %107 }
  0x6f   :  { %v125_v53 = vadd.f32 %v108_v35, %v77_v49  ;;  %v709_v49 = vld [vmem:[%s1018_s2 + $0xf0] sm:$0xff] }
  0x73   :  { %497 = vperm.xlu0 %737, %v704_v26  }
  0x74   :  { %v118_v28 = vpop.permute.xlu1 %117  ;;  %v154_v29 = vpop.permute.xlu0 %153 }
  0x75   :  { %v167_v42 = vmul.f32 %v846_v32, %v154_v29  ;;  %v657_v29 = vld [vmem:[%s1018_s2 + $0x50] sm:$0xff] }
  0x76   :  { %v49_v46 = vpop.permute.xlu2 %48  ;;  %223 = vperm.xlu1 %744, %v657_v29  }
  0x77   :  { %v75_v4 = vmul.f32 %v844_v31, %v49_v46  ;;  %v680_v46 = vld [vmem:[%s1018_s2 + $0x88] sm:$0xff] }
  0x7d   :  { %v158_v33 = vpop.permute.xlu1 %157  ;;  %v69_v34 = vpop.permute.xlu0 %68 }
  0x7e   :  { %v79_v36 = vmul.f32 %v844_v31, %v69_v34  ;;  %v168_v37 = vmul.f32 %v846_v32, %v158_v33  ;;  %v44_v55 = vpop.permute.xlu2 %43 }
  0x7f   :  { %v74_v12 = vmul.f32 %v844_v31, %v44_v55  ;;  %v703_v55 = vld [vmem:[%s1018_s2 + $0xc0] sm:$0xff] }
  0x80   :  { %v127_v38 = vadd.f32 %v118_v28, %v79_v36 }
  0x82   :  { %v176_v39 = vadd.f32 %v168_v37, %v127_v38 }
  0x84   :  { %v184_v40 = vmul.f32 0.01, %v176_v39 }
  0x85   :  { %v64_v41 = vpop.permute.xlu0 %63 }
  0x86   :  { %v78_v43 = vmul.f32 %v844_v31, %v64_v41  ;;  %v54_v44 = vpop.permute.xlu1 %53  ;;  %v192_v45 = vmax.f32 %v176_v39, %v184_v40  ;;  %v686_v40 = vld [vmem:[%s1018_s2 + $0xb8] sm:$0xff]  ;;  %v659_v41 = vld [vmem:[%s1018_s2 + $0x60] sm:$0xff] }
  0x87   :  { %v76_v59 = vmul.f32 %v844_v31, %v54_v44  ;;  %v142_v1 = vpop.permute.xlu2 %141  ;;  %388 = vperm.xlu1 %744, %v686_v40   ;;  %233 = vperm.xlu2 %743, %v659_v41   ;;  %v656_v44 = vld [vmem:[%s1018_s2 + $0x48] sm:$0xff]  ;;  %v687_v40 = vld [vmem:[%s1019_s1 + $0x80] sm:$0xff] }
  0x88   :  { %v126_v47 = vadd.f32 %v113_v27, %v78_v43  ;;  %284 = vmatpush.msra.mxu0 %v192_v45  ;;  %v164_v5 = vmul.f32 %v846_v32, %v142_v1  ;;  %v664_v45 = vld [vmem:[%s1019_s1 + $0x48] sm:$0xff] }
  0x89   :  { %v688_v41 = vld [vmem:[%s1019_s1 + $0x88] sm:$0xff] }
  0x8a   :  { %v175_v48 = vadd.f32 %v167_v42, %v126_v47  ;;  %v685_v47 = vld [vmem:[%s1018_s2 + $0xb0] sm:$0xff] }
  0x8c   :  { %v183_v50 = vmul.f32 0.01, %v175_v48 }
  0x8d   :  { %v103_v58 = vpop.permute.xlu0 %102 }
  0x8e   :  { %v191_v51 = vmax.f32 %v175_v48, %v183_v50  ;;  %v124_v62 = vadd.f32 %v103_v58, %v76_v59  ;;  %v665_v48 = vld [vmem:[%s1019_s1 + $0x50] sm:$0xff]  ;;  %v682_v50 = vld [vmem:[%s1018_s2 + $0x98] sm:$0xff] }
  0x8f   :  { %v150_v52 = vpop.permute.xlu1 %149  ;;  %v138_v10 = vpop.permute.xlu2 %137  ;;  %218 = vperm.xlu2 %743, %v656_v44   ;;  %v705_v58 = vld [vmem:[%s1018_s2 + $0xd0] sm:$0xff] }
  0x90   :  { %v166_v54 = vmul.f32 %v846_v32, %v150_v52  ;;  %285 = vmatpush.msra.mxu0 %v191_v51  ;;  %v163_v13 = vmul.f32 %v846_v32, %v138_v10  ;;  %v666_v51 = vld [vmem:[%s1019_s1 + $0x58] sm:$0xff]  ;;  %v669_v59 = vld [vmem:[%s1019_s1 + $0x70] sm:$0xff] }
  0x91   :  { %v706_v52 = vld [vmem:[%s1018_s2 + $0xd8] sm:$0xff]  ;;  %v693_v44 = vld [vmem:[%s1019_s1 + $0xb0] sm:$0xff] }
  0x92   :  { %v174_v56 = vadd.f32 %v166_v54, %v125_v53  ;;  %v679_v53 = vld [vmem:[%s1018_s2 + $0x80] sm:$0xff] }
  0x93   :  { %v667_v54 = vld [vmem:[%s1019_s1 + $0x60] sm:$0xff] }
  0x94   :  { %v182_v57 = vmul.f32 0.01, %v174_v56 }
  0x95   :  { %v39_v8 = vpop.permute.xlu0 %38 }
  0x96   :  { %v190_v60 = vmax.f32 %v174_v56, %v182_v57  ;;  %v73_v22 = vmul.f32 %v844_v31, %v39_v8  ;;  %v708_v56 = vld [vmem:[%s1018_s2 + $0xe8] sm:$0xff] }
  0x97   :  { %v146_v61 = vpop.permute.xlu1 %145  ;;  %v134_v21 = vpop.permute.xlu2 %133  ;;  %383 = vperm.xlu2 %743, %v685_v47   ;;  %v668_v57 = vld [vmem:[%s1019_s1 + $0x68] sm:$0xff] }
  0x98   :  { %v165_v63 = vmul.f32 %v846_v32, %v146_v61  ;;  %286 = vmatpush.msra.mxu0 %v190_v60  ;;  %v162_v25 = vmul.f32 %v846_v32, %v134_v21  ;;  %v727_v60 = vld [vmem:[%s1018_s2 + $0x100] sm:$0xff]  ;;  %v670_v61 = vld [vmem:[%s1019_s1 + $0x78] sm:$0xff] }
  0x9a   :  { %v173_v0 = vadd.f32 %v165_v63, %v124_v62 }
  0x9c   :  { %v181_v2 = vmul.f32 0.01, %v173_v0 }
  0x9d   :  { %v34_v18 = vpop.permute.xlu0 %33 }
  0x9e   :  { %v189_v3 = vmax.f32 %v173_v0, %v181_v2  ;;  %v72_v35 = vmul.f32 %v844_v31, %v34_v18  ;;  %v663_v31 = vld [vmem:[%s1019_s1 + $0x40] sm:$0xff] }
  0x9f   :  { %368 = vperm.xlu2 %743, %v682_v50  }
  0xa0   :  { %v98_v6 = vpop.permute.xlu1 %97  ;;  %287 = vmatpush.msra.mxu0 %v189_v3 }
  0xa1   :  { %v123_v7 = vadd.f32 %v98_v6, %v75_v4  ;;  %v249_v4 = vpop.permute.xlu2 %248 }
  0xa3   :  { %v172_v9 = vadd.f32 %v164_v5, %v123_v7 }
  0xa5   :  { %v180_v11 = vmul.f32 0.01, %v172_v9  ;;  %v83_v33 = vpop.permute.xlu0 %82 }
  0xa6   :  { %v120_v37 = vadd.f32 %v83_v33, %v72_v35 }
  0xa7   :  { %v188_v14 = vmax.f32 %v172_v9, %v180_v11  ;;  %353 = vperm.xlu2 %743, %v679_v53  }
  0xa8   :  { %v93_v15 = vpop.permute.xlu1 %92 }
  0xa9   :  { %v122_v16 = vadd.f32 %v93_v15, %v74_v12  ;;  %288 = vmatpush.msra.mxu0 %v188_v14 }
  0xab   :  { %v171_v17 = vadd.f32 %v163_v13, %v122_v16 }
  0xad   :  { %v179_v19 = vmul.f32 0.01, %v171_v17  ;;  %v244_v5 = vpop.permute.xlu0 %243 }
  0xaf   :  { %v187_v23 = vmax.f32 %v171_v17, %v179_v19  ;;  %517 = vperm.xlu2 %743, %v708_v56  }
  0xb0   :  { %v88_v24 = vpop.permute.xlu1 %87 }
  0xb1   :  { %v121_v26 = vadd.f32 %v88_v24, %v73_v22  ;;  %289 = vmatpush.msra.mxu0 %v187_v23 }
  0xb3   :  { %v170_v27 = vadd.f32 %v162_v25, %v121_v26 }
  0xb5   :  { %v178_v28 = vmul.f32 0.01, %v170_v27  ;;  %v229_v10 = vpop.permute.xlu0 %228 }
  0xb7   :  { %v186_v34 = vmax.f32 %v170_v27, %v178_v28  ;;  %502 = vperm.xlu2 %743, %v705_v58  }
  0xb9   :  { %v130_v36 = vpop.permute.xlu1 %129  ;;  %290 = vmatpush.msra.mxu0 %v186_v34 }
  0xba   :  { %v161_v38 = vmul.f32 %v846_v32, %v130_v36  ;;  %v683_v32 = vld [vmem:[%s1018_s2 + $0xa0] sm:$0xff] }
  0xbb   :  { %373 = vperm.xlu1 %744, %v683_v32   ;;  %v692_v32 = vld [vmem:[%s1019_s1 + $0xa8] sm:$0xff] }
  0xbc   :  { %v169_v39 = vadd.f32 %v161_v38, %v120_v37 }
  0xbd   :  { %v214_v28 = vpop.permute.xlu0 %213 }
  0xbe   :  { %v177_v42 = vmul.f32 0.01, %v169_v39 }
  0xbf   :  { %617 = vperm.xlu2 %743, %v727_v60  }
  0xc0   :  { %v185_v43 = vmax.f32 %v169_v39, %v177_v42  ;;  %v689_v42 = vld [vmem:[%s1019_s1 + $0x90] sm:$0xff] }
  0xc2   :  { %291 = vmatpush.msra.mxu0 %v185_v43  ;;  %v239_v7 = vpop.permute.xlu1 %238  ;;  %v690_v43 = vld [vmem:[%s1019_s1 + $0x98] sm:$0xff] }
  0xc3   :  { %671 = vmatmul.msk.f32.vlgmr.msra.gmra.mxu0 %vm251_vm0, %v663_v31  ;;  %358 = vperm.xlu1 %744, %v680_v46   ;;  %v691_v31 = vld [vmem:[%s1019_s1 + $0xa0] sm:$0xff] }
  0xcb   :  { %672 = vmatmul.msk.f32.gmra.mxu0 %vm251_vm0, %v664_v45  ;;  %522 = vperm.xlu1 %744, %v709_v49   ;;  %v694_v45 = vld [vmem:[%s1019_s1 + $0xb8] sm:$0xff] }
  0xd3   :  { %673 = vmatmul.msk.f32.gmra.mxu0 %vm251_vm0, %v665_v48  ;;  %507 = vperm.xlu1 %744, %v706_v52  }
  0xdb   :  { %674 = vmatmul.msk.f32.gmra.mxu0 %vm251_vm0, %v666_v51  ;;  %492 = vperm.xlu1 %744, %v703_v55   ;;  %v379_v55 = vpop.permute.xlu0 %378 }
  0xe1   :  { %v234_v8 = vpop.permute.xlu2 %233 }
  0xe3   :  { %675 = vmatmul.msk.f32.gmra.mxu0 %vm251_vm0, %v667_v54 }
  0xe8   :  { %v224_v20 = vpop.permute.xlu1 %223 }
  0xe9   :  { %v219_v24 = vpop.permute.xlu2 %218 }
  0xeb   :  { %676 = vmatmul.msk.f32.gmra.mxu0 %vm251_vm0, %v668_v57 }
  0xf1   :  { %v384_v53 = vpop.permute.xlu2 %383 }
  0xf3   :  { %677 = vmatmul.msk.f32.gmra.mxu0 %vm251_vm0, %v669_v59 }
  0xf9   :  { %v389_v52 = vpop.permute.xlu1 %388  ;;  %v369_v58 = vpop.permute.xlu2 %368 }
  0xfb   :  { %678 = vmatmul.msk.f32.gmra.mxu0 %vm251_vm0, %v670_v61 }
 0x12d   :  { %v374_v56 = vpop.permute.xlu1 %373 }
 0x140   :  { %v293_v62 = vpop.f32.mrf.mxu0 }
 0x141   :  { %v294_v29 = vadd.f32 %v293_v62, %v214_v28  ;;  %v717_v28 = vld [vmem:[%s1019_s1 + $0xf0] sm:$0xff] }
 0x143   :  { %v317_v36 = vmul.f32 0.01, %v294_v29 }
 0x145   :  { %v325_v39 = vmax.f32 %v294_v29, %v317_v36  ;;  %v718_v29 = vld [vmem:[%s1019_s1 + $0xf8] sm:$0xff] }
 0x148   :  { %v296_v63 = vpop.f32.mrf.mxu0 }
 0x149   :  { %v297_v25 = vadd.f32 %v296_v63, %v219_v24  ;;  %v713_v24 = vld [vmem:[%s1019_s1 + $0xd0] sm:$0xff] }
 0x14b   :  { %v318_v34 = vmul.f32 0.01, %v297_v25 }
 0x14d   :  { %v326_v38 = vmax.f32 %v297_v25, %v318_v34  ;;  %v714_v25 = vld [vmem:[%s1019_s1 + $0xd8] sm:$0xff] }
 0x150   :  { %v299_v0 = vpop.f32.mrf.mxu0 }
 0x151   :  { %v300_v21 = vadd.f32 %v299_v0, %v224_v20 }
 0x153   :  { %v319_v30 = vmul.f32 0.01, %v300_v21 }
 0x155   :  { %v327_v37 = vmax.f32 %v300_v21, %v319_v30 }
 0x158   :  { %v302_v1 = vpop.f32.mrf.mxu0 }
 0x159   :  { %v303_v17 = vadd.f32 %v302_v1, %v229_v10 }
 0x15b   :  { %v320_v26 = vmul.f32 0.01, %v303_v17 }
 0x15d   :  { %v328_v35 = vmax.f32 %v303_v17, %v320_v26  ;;  %v715_v26 = vld [vmem:[%s1019_s1 + $0xe0] sm:$0xff] }
 0x160   :  { %v305_v2 = vpop.f32.mrf.mxu0 }
 0x161   :  { %v306_v14 = vadd.f32 %v305_v2, %v234_v8  ;;  %v359_v8 = vpop.permute.xlu1 %358 }
 0x163   :  { %v321_v22 = vmul.f32 0.01, %v306_v14 }
 0x165   :  { %v329_v33 = vmax.f32 %v306_v14, %v321_v22  ;;  %v711_v22 = vld [vmem:[%s1019_s1 + $0xc0] sm:$0xff] }
 0x168   :  { %v308_v3 = vpop.f32.mrf.mxu0 }
 0x169   :  { %v309_v12 = vadd.f32 %v308_v3, %v239_v7 }
 0x16b   :  { %v322_v18 = vmul.f32 0.01, %v309_v12 }
 0x16d   :  { %v330_v27 = vmax.f32 %v309_v12, %v322_v18  ;;  %v354_v12 = vpop.permute.xlu2 %353 }
 0x170   :  { %v311_v6 = vpop.f32.mrf.mxu0 }
 0x171   :  { %v312_v9 = vadd.f32 %v311_v6, %v244_v5 }
 0x173   :  { %v323_v15 = vmul.f32 0.01, %v312_v9 }
 0x175   :  { %v331_v23 = vmax.f32 %v312_v9, %v323_v15 }
 0x178   :  { %v314_v11 = vpop.f32.mrf.mxu0 }
 0x179   :  { %v315_v13 = vadd.f32 %v314_v11, %v249_v4  ;;  %v364_v4 = vpop.permute.xlu0 %363 }
 0x17b   :  { %v324_v16 = vmul.f32 0.01, %v315_v13 }
 0x17d   :  { %v332_v19 = vmax.f32 %v315_v13, %v324_v16 }
 0x17f   :  { %423 = vmatpush.msra.mxu1 %v332_v19 }
 0x181   :  { %424 = vmatpush.msra.mxu1 %v331_v23  ;;  %v712_v23 = vld [vmem:[%s1019_s1 + $0xc8] sm:$0xff] }
 0x183   :  { %425 = vmatpush.msra.mxu1 %v330_v27  ;;  %v716_v27 = vld [vmem:[%s1019_s1 + $0xe8] sm:$0xff] }
 0x185   :  { %426 = vmatpush.msra.mxu1 %v329_v33 }
 0x187   :  { %427 = vmatpush.msra.mxu1 %v328_v35 }
 0x189   :  { %428 = vmatpush.msra.mxu1 %v327_v37 }
 0x18b   :  { %429 = vmatpush.msra.mxu1 %v326_v38  ;;  %v528_v38 = vpop.permute.xlu0 %527 }
 0x18d   :  { %430 = vmatpush.msra.mxu1 %v325_v39  ;;  %v523_v39 = vpop.permute.xlu1 %522 }
 0x18e   :  { %695 = vmatmul.msk.f32.vlgmr.msra.gmra.mxu1 %vm251_vm0, %v687_v40 }
 0x196   :  { %696 = vmatmul.msk.f32.gmra.mxu1 %vm251_vm0, %v688_v41  ;;  %v518_v41 = vpop.permute.xlu2 %517 }
 0x19e   :  { %697 = vmatmul.msk.f32.gmra.mxu1 %vm251_vm0, %v689_v42  ;;  %v513_v42 = vpop.permute.xlu0 %512 }
 0x1a6   :  { %698 = vmatmul.msk.f32.gmra.mxu1 %vm251_vm0, %v690_v43 }
 0x1ae   :  { %699 = vmatmul.msk.f32.gmra.mxu1 %vm251_vm0, %v691_v31  ;;  %v508_v31 = vpop.permute.xlu1 %507 }
 0x1b6   :  { %700 = vmatmul.msk.f32.gmra.mxu1 %vm251_vm0, %v692_v32 }
 0x1be   :  { %701 = vmatmul.msk.f32.gmra.mxu1 %vm251_vm0, %v693_v44 }
 0x1c6   :  { %702 = vmatmul.msk.f32.gmra.mxu1 %vm251_vm0, %v694_v45 }
 0x20b   :  { %v432_v46 = vpop.f32.mrf.mxu1 }
 0x20c   :  { %v433_v13 = vadd.f32 %v432_v46, %v354_v12 }
 0x20e   :  { %v456_v18 = vmul.f32 0.01, %v433_v13 }
 0x210   :  { %v464_v21 = vmax.f32 %v433_v13, %v456_v18 }
 0x213   :  { %v435_v47 = vpop.f32.mrf.mxu1 }
 0x214   :  { %v436_v9 = vadd.f32 %v435_v47, %v359_v8 }
 0x216   :  { %v457_v16 = vmul.f32 0.01, %v436_v9 }
 0x218   :  { %v465_v20 = vmax.f32 %v436_v9, %v457_v16 }
 0x21b   :  { %v438_v48 = vpop.f32.mrf.mxu1 }
 0x21c   :  { %v439_v5 = vadd.f32 %v438_v48, %v364_v4 }
 0x21e   :  { %v458_v14 = vmul.f32 0.01, %v439_v5 }
 0x220   :  { %v466_v19 = vmax.f32 %v439_v5, %v458_v14 }
 0x223   :  { %v441_v49 = vpop.f32.mrf.mxu1 }
 0x224   :  { %v442_v1 = vadd.f32 %v441_v49, %v369_v58 }
 0x226   :  { %v459_v10 = vmul.f32 0.01, %v442_v1 }
 0x228   :  { %v467_v17 = vmax.f32 %v442_v1, %v459_v10 }
 0x22b   :  { %v444_v50 = vpop.f32.mrf.mxu1 }
 0x22c   :  { %v445_v62 = vadd.f32 %v444_v50, %v374_v56  ;;  %v498_v56 = vpop.permute.xlu0 %497 }
 0x22e   :  { %v460_v6 = vmul.f32 0.01, %v445_v62 }
 0x230   :  { %v468_v15 = vmax.f32 %v445_v62, %v460_v6  ;;  %v728_v6 = vld [vmem:[%s1019_s1 + $0x100] sm:$0xff] }
 0x233   :  { %v447_v51 = vpop.f32.mrf.mxu1 }
 0x234   :  { %v448_v60 = vadd.f32 %v447_v51, %v379_v55 }
 0x236   :  { %v461_v2 = vmul.f32 0.01, %v448_v60 }
 0x238   :  { %v469_v11 = vmax.f32 %v448_v60, %v461_v2  ;;  %v493_v60 = vpop.permute.xlu1 %492 }
 0x23b   :  { %v450_v54 = vpop.f32.mrf.mxu1 }
 0x23c   :  { %v451_v57 = vadd.f32 %v450_v54, %v384_v53 }
 0x23e   :  { %v462_v63 = vmul.f32 0.01, %v451_v57 }
 0x240   :  { %v470_v7 = vmax.f32 %v451_v57, %v462_v63 }
 0x243   :  { %v453_v59 = vpop.f32.mrf.mxu1 }
 0x244   :  { %v454_v61 = vadd.f32 %v453_v59, %v389_v52  ;;  %v503_v52 = vpop.permute.xlu2 %502 }
 0x246   :  { %v463_v0 = vmul.f32 0.01, %v454_v61 }
 0x248   :  { %v471_v3 = vmax.f32 %v454_v61, %v463_v0 }
 0x24a   :  { %562 = vmatpush.msra.mxu2 %v471_v3 }
 0x24c   :  { %563 = vmatpush.msra.mxu2 %v470_v7  ;;  %v618_v7 = vpop.permute.xlu2 %617 }
 0x24e   :  { %564 = vmatpush.msra.mxu2 %v469_v11 }
 0x250   :  { %565 = vmatpush.msra.mxu2 %v468_v15 }
 0x252   :  { %566 = vmatpush.msra.mxu2 %v467_v17 }
 0x254   :  { %567 = vmatpush.msra.mxu2 %v466_v19 }
 0x256   :  { %568 = vmatpush.msra.mxu2 %v465_v20 }
 0x258   :  { %569 = vmatpush.msra.mxu2 %v464_v21 }
 0x259   :  { %719 = vmatmul.msk.f32.vlgmr.msra.gmra.mxu2 %vm251_vm0, %v711_v22 }
 0x261   :  { %720 = vmatmul.msk.f32.gmra.mxu2 %vm251_vm0, %v712_v23 }
 0x269   :  { %721 = vmatmul.msk.f32.gmra.mxu2 %vm251_vm0, %v713_v24 }
 0x271   :  { %722 = vmatmul.msk.f32.gmra.mxu2 %vm251_vm0, %v714_v25 }
 0x279   :  { %723 = vmatmul.msk.f32.gmra.mxu2 %vm251_vm0, %v715_v26 }
 0x281   :  { %724 = vmatmul.msk.f32.gmra.mxu2 %vm251_vm0, %v716_v27 }
 0x289   :  { %725 = vmatmul.msk.f32.gmra.mxu2 %vm251_vm0, %v717_v28 }
 0x291   :  { %726 = vmatmul.msk.f32.gmra.mxu2 %vm251_vm0, %v718_v29 }
 0x2dc   :  { %v571_v30 = vpop.f32.mrf.mxu2 }
 0x2dd   :  { %v572_v61 = vadd.f32 %v571_v30, %v493_v60 }
 0x2df   :  { %v595_v2 = vmul.f32 0.01, %v572_v61 }
 0x2e1   :  { %v603_v5 = vmax.f32 %v572_v61, %v595_v2 }
 0x2e4   :  { %v574_v33 = vpop.f32.mrf.mxu2 }
 0x2e5   :  { %v575_v57 = vadd.f32 %v574_v33, %v498_v56 }
 0x2e7   :  { %v596_v0 = vmul.f32 0.01, %v575_v57 }
 0x2e9   :  { %v604_v4 = vmax.f32 %v575_v57, %v596_v0 }
 0x2ec   :  { %v577_v34 = vpop.f32.mrf.mxu2 }
 0x2ed   :  { %v578_v53 = vadd.f32 %v577_v34, %v503_v52 }
 0x2ef   :  { %v597_v62 = vmul.f32 0.01, %v578_v53 }
 0x2f1   :  { %v605_v3 = vmax.f32 %v578_v53, %v597_v62 }
 0x2f4   :  { %v580_v35 = vpop.f32.mrf.mxu2 }
 0x2f5   :  { %v581_v49 = vadd.f32 %v580_v35, %v508_v31 }
 0x2f7   :  { %v598_v58 = vmul.f32 0.01, %v581_v49 }
 0x2f9   :  { %v606_v1 = vmax.f32 %v581_v49, %v598_v58 }
 0x2fc   :  { %v583_v36 = vpop.f32.mrf.mxu2 }
 0x2fd   :  { %v584_v46 = vadd.f32 %v583_v36, %v513_v42 }
 0x2ff   :  { %v599_v54 = vmul.f32 0.01, %v584_v46 }
 0x301   :  { %v607_v63 = vmax.f32 %v584_v46, %v599_v54 }
 0x304   :  { %v586_v37 = vpop.f32.mrf.mxu2 }
 0x305   :  { %v587_v44 = vadd.f32 %v586_v37, %v518_v41 }
 0x307   :  { %v600_v50 = vmul.f32 0.01, %v587_v44 }
 0x309   :  { %v608_v59 = vmax.f32 %v587_v44, %v600_v50 }
 0x30c   :  { %v589_v40 = vpop.f32.mrf.mxu2 }
 0x30d   :  { %v590_v43 = vadd.f32 %v589_v40, %v523_v39 }
 0x30f   :  { %v601_v47 = vmul.f32 0.01, %v590_v43 }
 0x311   :  { %v609_v55 = vmax.f32 %v590_v43, %v601_v47 }
 0x314   :  { %v592_v32 = vpop.f32.mrf.mxu2 }
 0x315   :  { %v593_v45 = vadd.f32 %v592_v32, %v528_v38 }
 0x317   :  { %v602_v48 = vmul.f32 0.01, %v593_v45 }
 0x319   :  { %v610_v51 = vmax.f32 %v593_v45, %v602_v48 }
 0x31b   :  { %631 = vmatpush.msra.mxu3 %v610_v51 }
 0x31d   :  { %632 = vmatpush.msra.mxu3 %v609_v55 }
 0x31f   :  { %633 = vmatpush.msra.mxu3 %v608_v59 }
 0x321   :  { %634 = vmatpush.msra.mxu3 %v607_v63 }
 0x323   :  { %635 = vmatpush.msra.mxu3 %v606_v1 }
 0x325   :  { %636 = vmatpush.msra.mxu3 %v605_v3 }
 0x327   :  { %637 = vmatpush.msra.mxu3 %v604_v4 }
 0x329   :  { %638 = vmatpush.msra.mxu3 %v603_v5 }
 0x32a   :  { %729 = vmatmul.msk.f32.vlgmr.msra.gmra.mxu3 %vm251_vm0, %v728_v6 }
 0x3ad   :  { %v640_v8 = vpop.f32.mrf.mxu3 }
 0x3ae   :  { %v641_v9 = vadd.f32 %v640_v8, %v618_v7 }
 0x3b0   :  { %v644_v10 = vmin.f32 %v641_v9, 0.0  ;;  %vm643_vm1 = vcmp.gt.f32.partialorder %v641_v9, 0.0 }
 0x3b2   :  { %v645_v11 = vmul.f32 1.442695, %v644_v10 }
 0x3b4   :  { %745 = vpow2.f32 %v645_v11 }
 0x3ba   :  { %v746_v12 = vpop.eup %745 }
 0x3bb   :  { %v730_v13 = vadd.f32 -1.0, %v746_v12 }
 0x3bd   :  { %v648_v14 = vsel %vm643_vm1, %v641_v9, %v730_v13 }
 0x3be   :  { %v649_v15 = vadd.f32 1.0, %v648_v14 }
 0x3c0   :  { %650 = vst [vmem:[%s1021_s3] sm:$0x1] %v649_v15 }

</bundles_post_ra>
